<compile_context>
chip_gen: v5e
topology: v5e:2x2
jax: 0.10.0
libtpu: 0.0.40
codegen_flags: <defaults>
</compile_context>

<pallas_src>
import jax
import jax.numpy as jnp
from jax.experimental import pallas as pl
from jax.experimental.pallas import tpu as pltpu


def _round_up(x, m):
    return ((x + m - 1) // m) * m


def classifier_kernel(x_ref, w1_ref, b1_ref, w2_ref, b2_ref, w3_ref, b3_ref, o_ref):
    # Whole MLP fused on one (tile_b, .) batch tile; weights/biases stay VMEM
    # resident across grid steps (constant index_maps).
    cdt = w1_ref.dtype                       # MXU operand dtype (bf16 by default)
    x = x_ref[...].astype(cdt)

    # fc1 + ReLU  (dropout == identity in eval mode). f32 accumulate/bias/ReLU.
    h1 = jnp.dot(x, w1_ref[...], preferred_element_type=jnp.float32) + b1_ref[...]
    h1 = jnp.maximum(h1, 0.0).astype(cdt)

    # fc2 + ReLU
    h2 = jnp.dot(h1, w2_ref[...], preferred_element_type=jnp.float32) + b2_ref[...]
    h2 = jnp.maximum(h2, 0.0).astype(cdt)

    # fc3 (logits). Hidden pad lanes are exact zeros; output pad lanes carry a
    # -1e30 bias, so exp underflows to 0 below and the log_softmax over the real
    # lanes is unchanged (pad columns are sliced off in the wrapper).
    logits = jnp.dot(h2, w3_ref[...], preferred_element_type=jnp.float32) + b3_ref[...]

    # log_softmax over the feature axis (dim=1) on a lane-dense 128-multiple tile.
    m = jnp.max(logits, axis=-1, keepdims=True)
    z = logits - m
    lse = jnp.log(jnp.sum(jnp.exp(z), axis=-1, keepdims=True))
    o_ref[...] = (z - lse).astype(o_ref.dtype)


def prepare_params(w1, b1, w2, b2, w3, b3, *, compute_dtype=jnp.bfloat16):
    """One-time weight transform (hoist out of the per-call path).

    wN: (in, out) = nn.Linear weight transposed; bN: (1, out).
      * fc1/fc2 output dims zero-padded to multiples of 128 (mathematically exact),
      * fc3 output dim padded to a multiple of 128 with zero weight columns and
        -1e30 bias lanes (exp -> 0, log_softmax unchanged),
      * weight matrices cast to the MXU operand dtype; biases stay float32.
    """
    h1 = w1.shape[1]
    h2 = w2.shape[1]
    d_out = w3.shape[1]
    h1p, h2p, d_outp = _round_up(h1, 128), _round_up(h2, 128), _round_up(d_out, 128)

    w1p = jnp.pad(w1, ((0, 0), (0, h1p - h1)))
    b1p = jnp.pad(b1, ((0, 0), (0, h1p - h1)))
    w2p = jnp.pad(w2, ((0, h1p - h1), (0, h2p - h2)))
    b2p = jnp.pad(b2, ((0, 0), (0, h2p - h2)))
    w3p = jnp.pad(w3, ((0, h2p - h2), (0, d_outp - d_out)))
    b3p = jnp.pad(b3, ((0, 0), (0, d_outp - d_out)),
                  constant_values=jnp.float32(-1e30))

    return dict(
        w1=w1p.astype(compute_dtype), b1=b1p.astype(jnp.float32),
        w2=w2p.astype(compute_dtype), b2=b2p.astype(jnp.float32),
        w3=w3p.astype(compute_dtype), b3=b3p.astype(jnp.float32),
        out_units=d_out,
    )


def classifier_forward(x, params, *, tile_b=2048, out_dtype=jnp.float32):
    """x: (B, input_units); params from prepare_params(). Returns (B, output_units).

    Pass bf16 x / out_dtype=jnp.bfloat16 if downstream tolerates it to halve the
    dominant HBM traffic of this memory-bound kernel.
    """
    w1, b1 = params["w1"], params["b1"]
    w2, b2 = params["w2"], params["b2"]
    w3, b3 = params["w3"], params["b3"]
    out_units = params["out_units"]

    B, d_in = x.shape
    out_pad = w3.shape[1]

    # Batch tile: multiple of 8 sublanes, no larger than the (rounded-up) batch,
    # and capped at mid/large batch so the parallel grid keeps >= 2 steps and
    # v7x's two TensorCores can both take work (harmless on 1-TC v5e/v6e).
    tile_b = min(tile_b, _round_up(B, 8))
    if B > 1024:
        tile_b = min(tile_b, max(512, _round_up(pl.cdiv(B, 2), 8)))
    tile_b = max(8, _round_up(tile_b, 8))

    grid = (pl.cdiv(B, tile_b),)
    resident = lambda shape: pl.BlockSpec(shape, lambda i: (0, 0))

    out = pl.pallas_call(
        classifier_kernel,
        out_shape=jax.ShapeDtypeStruct((B, out_pad), out_dtype),
        grid=grid,
        in_specs=[
            pl.BlockSpec((tile_b, d_in), lambda i: (i, 0)),
            resident(w1.shape), resident(b1.shape),
            resident(w2.shape), resident(b2.shape),
            resident(w3.shape), resident(b3.shape),
        ],
        out_specs=pl.BlockSpec((tile_b, out_pad), lambda i: (i, 0)),
        compiler_params=pltpu.CompilerParams(
            dimension_semantics=("parallel",)),
    )(x, w1, b1, w2, b2, w3, b3)

    # Drop the pad lanes of the logits (no batch slice needed: out_shape is (B, .)).
    return out[:, :out_units]


def init_linear(key, fan_in, fan_out):
    """Deterministic init mimicking nn.Linear's uniform(-1/sqrt(fan_in), 1/sqrt(fan_in)).
    Returns W already transposed to (fan_in, fan_out) and b as (1, fan_out)."""
    kw, kb = jax.random.split(key)
    bound = 1.0 / jnp.sqrt(fan_in)
    w = jax.random.uniform(kw, (fan_in, fan_out), jnp.float32, -bound, bound)
    b = jax.random.uniform(kb, (1, fan_out), jnp.float32, -bound, bound)
    return w, b


if __name__ == "__main__":
    # Shapes consistent with Classifier(input_units=64, hidden_layers_1_units=128,
    #                                    hidden_layers_2_units=64, output_units=102)
    B, D_IN, H1, H2, D_OUT = 8, 64, 128, 64, 102

    key = jax.random.PRNGKey(0)
    kx, k1, k2, k3 = jax.random.split(key, 4)

    x = jax.random.normal(kx, (B, D_IN), jnp.float32)
    w1, b1 = init_linear(k1, D_IN, H1)
    w2, b2 = init_linear(k2, H1, H2)
    w3, b3 = init_linear(k3, H2, D_OUT)

    # Pure-JAX reference (eval-mode dropout == identity).
    h1 = jnp.maximum(x @ w1 + b1, 0.0)
    h2 = jnp.maximum(h1 @ w2 + b2, 0.0)
    ref = jax.nn.log_softmax(h2 @ w3 + b3, axis=1)

    # f32 operand path (tolerance covers MXU multi-pass vs XLA default precision).
    params_f32 = prepare_params(w1, b1, w2, b2, w3, b3, compute_dtype=jnp.float32)
    out_f32 = jax.block_until_ready(classifier_forward(x, params_f32))
    assert out_f32.shape == (B, D_OUT)
    assert jnp.allclose(out_f32, ref, atol=1e-2), "f32 path mismatch"

    # Default bf16 operand path (f32 accumulation / bias / ReLU / softmax).
    params = prepare_params(w1, b1, w2, b2, w3, b3)
    out_bf16 = jax.block_until_ready(classifier_forward(x, params))
    assert out_bf16.shape == (B, D_OUT)
    assert jnp.allclose(out_bf16, ref, atol=5e-2), "bf16 path mismatch"

    print("KERNEL_OK")
</pallas_src>

<mosaic_0001>
module attributes {stable_mosaic.version = 11 : i64} {
  func.func @classifier_kernel(%arg0: i32, %arg1: memref<8x64xf32, #tpu.memory_space<vmem>>, %arg2: memref<64x128xf32, #tpu.memory_space<vmem>>, %arg3: memref<1x128xf32, #tpu.memory_space<vmem>>, %arg4: memref<128x128xf32, #tpu.memory_space<vmem>>, %arg5: memref<1x128xf32, #tpu.memory_space<vmem>>, %arg6: memref<128x128xf32, #tpu.memory_space<vmem>>, %arg7: memref<1x128xf32, #tpu.memory_space<vmem>>, %arg8: memref<8x128xf32, #tpu.memory_space<vmem>>) attributes {dimension_semantics = [#tpu.dimension_semantics<parallel>], iteration_bounds = array<i64: 1>, scalar_prefetch = 0 : i64, scratch_operands = 0 : i64, tpu.core_type = #tpu.core_type<tc>, window_params = [{transform_indices = @transform_0, window_bounds = array<i64: 8, 64>}, {pipeline_mode = #tpu.pipeline_mode<synchronous>, transform_indices = @transform_1, window_bounds = array<i64: 64, 128>}, {pipeline_mode = #tpu.pipeline_mode<synchronous>, transform_indices = @transform_2, window_bounds = array<i64: 1, 128>}, {pipeline_mode = #tpu.pipeline_mode<synchronous>, transform_indices = @transform_3, window_bounds = array<i64: 128, 128>}, {pipeline_mode = #tpu.pipeline_mode<synchronous>, transform_indices = @transform_4, window_bounds = array<i64: 1, 128>}, {pipeline_mode = #tpu.pipeline_mode<synchronous>, transform_indices = @transform_5, window_bounds = array<i64: 128, 128>}, {pipeline_mode = #tpu.pipeline_mode<synchronous>, transform_indices = @transform_6, window_bounds = array<i64: 1, 128>}, {transform_indices = @transform_7, window_bounds = array<i64: 8, 128>}]} {
    %c0 = arith.constant 0 : index
    %c0_0 = arith.constant 0 : index
    %0 = vector.load %arg1[%c0, %c0_0] : memref<8x64xf32, #tpu.memory_space<vmem>>, vector<8x64xf32>
    %c0_1 = arith.constant 0 : index
    %c0_2 = arith.constant 0 : index
    %1 = vector.load %arg2[%c0_1, %c0_2] : memref<64x128xf32, #tpu.memory_space<vmem>>, vector<64x128xf32>
    %cst = arith.constant dense<0.000000e+00> : vector<8x128xf32>
    %2 = tpu.matmul %0, %1, %cst {dimension_numbers = #tpu.dot_dimension_numbers<[1], [0], [0], [1], [0, 0, 1, 1], [], []>} : vector<8x64xf32>, vector<64x128xf32>, vector<8x128xf32> -> vector<8x128xf32>
    %c0_3 = arith.constant 0 : index
    %c0_4 = arith.constant 0 : index
    %3 = vector.load %arg3[%c0_3, %c0_4] : memref<1x128xf32, #tpu.memory_space<vmem>>, vector<1x128xf32>
    %4 = vector.broadcast %3 : vector<1x128xf32> to vector<8x128xf32>
    %5 = arith.addf %2, %4 : vector<8x128xf32>
    %cst_5 = arith.constant 0.000000e+00 : f32
    %6 = vector.broadcast %cst_5 : f32 to vector<8x128xf32>
    %7 = arith.maximumf %5, %6 : vector<8x128xf32>
    %c0_6 = arith.constant 0 : index
    %c0_7 = arith.constant 0 : index
    %8 = vector.load %arg4[%c0_6, %c0_7] : memref<128x128xf32, #tpu.memory_space<vmem>>, vector<128x128xf32>
    %cst_8 = arith.constant dense<0.000000e+00> : vector<8x128xf32>
    %9 = tpu.matmul %7, %8, %cst_8 {dimension_numbers = #tpu.dot_dimension_numbers<[1], [0], [0], [1], [0, 0, 1, 1], [], []>} : vector<8x128xf32>, vector<128x128xf32>, vector<8x128xf32> -> vector<8x128xf32>
    %c0_9 = arith.constant 0 : index
    %c0_10 = arith.constant 0 : index
    %10 = vector.load %arg5[%c0_9, %c0_10] : memref<1x128xf32, #tpu.memory_space<vmem>>, vector<1x128xf32>
    %11 = vector.broadcast %10 : vector<1x128xf32> to vector<8x128xf32>
    %12 = arith.addf %9, %11 : vector<8x128xf32>
    %cst_11 = arith.constant 0.000000e+00 : f32
    %13 = vector.broadcast %cst_11 : f32 to vector<8x128xf32>
    %14 = arith.maximumf %12, %13 : vector<8x128xf32>
    %c0_12 = arith.constant 0 : index
    %c0_13 = arith.constant 0 : index
    %15 = vector.load %arg6[%c0_12, %c0_13] : memref<128x128xf32, #tpu.memory_space<vmem>>, vector<128x128xf32>
    %cst_14 = arith.constant dense<0.000000e+00> : vector<8x128xf32>
    %16 = tpu.matmul %14, %15, %cst_14 {dimension_numbers = #tpu.dot_dimension_numbers<[1], [0], [0], [1], [0, 0, 1, 1], [], []>} : vector<8x128xf32>, vector<128x128xf32>, vector<8x128xf32> -> vector<8x128xf32>
    %c0_15 = arith.constant 0 : index
    %c0_16 = arith.constant 0 : index
    %17 = vector.load %arg7[%c0_15, %c0_16] : memref<1x128xf32, #tpu.memory_space<vmem>>, vector<1x128xf32>
    %18 = vector.broadcast %17 : vector<1x128xf32> to vector<8x128xf32>
    %19 = arith.addf %16, %18 : vector<8x128xf32>
    %cst_17 = arith.constant dense<0xFF800000> : vector<8xf32>
    %20 = vector.multi_reduction <maximumf>, %19, %cst_17 [1] : vector<8x128xf32> to vector<8xf32>
    %21 = vector.shape_cast %20 : vector<8xf32> to vector<8x1xf32>
    %22 = vector.broadcast %21 : vector<8x1xf32> to vector<8x128xf32>
    %23 = arith.subf %19, %22 : vector<8x128xf32>
    %24 = math.exp %23 : vector<8x128xf32>
    %cst_18 = arith.constant dense<0.000000e+00> : vector<8xf32>
    %25 = vector.multi_reduction <add>, %24, %cst_18 [1] : vector<8x128xf32> to vector<8xf32>
    %26 = vector.shape_cast %25 : vector<8xf32> to vector<8x1xf32>
    %27 = math.log %26 : vector<8x1xf32>
    %28 = vector.broadcast %27 : vector<8x1xf32> to vector<8x128xf32>
    %29 = arith.subf %23, %28 : vector<8x128xf32>
    %c0_19 = arith.constant 0 : index
    %c0_20 = arith.constant 0 : index
    %30 = vector.load %arg8[%c0_19, %c0_20] : memref<8x128xf32, #tpu.memory_space<vmem>>, vector<8x128xf32>
    tpu.vector_store %arg8[%c0_19, %c0_20], %29 {strides = array<i32>} : memref<8x128xf32, #tpu.memory_space<vmem>>, vector<8x128xf32>,
    return
  }
  func.func @transform_0(%arg0: i32) -> (i32, i32) {
    %c0_i32 = arith.constant 0 : i32
    %c0_i32_0 = arith.constant 0 : i32
    return %arg0, %c0_i32 : i32, i32
  }
  func.func @transform_1(%arg0: i32) -> (i32, i32) {
    %c0_i32 = arith.constant 0 : i32
    %c0_i32_0 = arith.constant 0 : i32
    %c0_i32_1 = arith.constant 0 : i32
    return %c0_i32, %c0_i32_0 : i32, i32
  }
  func.func @transform_2(%arg0: i32) -> (i32, i32) {
    %c0_i32 = arith.constant 0 : i32
    %c0_i32_0 = arith.constant 0 : i32
    %c0_i32_1 = arith.constant 0 : i32
    return %c0_i32, %c0_i32_0 : i32, i32
  }
  func.func @transform_3(%arg0: i32) -> (i32, i32) {
    %c0_i32 = arith.constant 0 : i32
    %c0_i32_0 = arith.constant 0 : i32
    %c0_i32_1 = arith.constant 0 : i32
    return %c0_i32, %c0_i32_0 : i32, i32
  }
  func.func @transform_4(%arg0: i32) -> (i32, i32) {
    %c0_i32 = arith.constant 0 : i32
    %c0_i32_0 = arith.constant 0 : i32
    %c0_i32_1 = arith.constant 0 : i32
    return %c0_i32, %c0_i32_0 : i32, i32
  }
  func.func @transform_5(%arg0: i32) -> (i32, i32) {
    %c0_i32 = arith.constant 0 : i32
    %c0_i32_0 = arith.constant 0 : i32
    %c0_i32_1 = arith.constant 0 : i32
    return %c0_i32, %c0_i32_0 : i32, i32
  }
  func.func @transform_6(%arg0: i32) -> (i32, i32) {
    %c0_i32 = arith.constant 0 : i32
    %c0_i32_0 = arith.constant 0 : i32
    %c0_i32_1 = arith.constant 0 : i32
    return %c0_i32, %c0_i32_0 : i32, i32
  }
  func.func @transform_7(%arg0: i32) -> (i32, i32) {
    %c0_i32 = arith.constant 0 : i32
    %c0_i32_0 = arith.constant 0 : i32
    return %arg0, %c0_i32 : i32, i32
  }
}

</mosaic_0001>

<bundles_post_ra>
// kernel: tpu_custom_call.1
= control target key start
LH: loop header
LB: loop body
LE: loop exit
PB: predicated region body
PF: predicated region fallthrough
CT: control target
= control target key end

     0   :  { %12 = vsyncpa [#allocation3], 0  ;;  %s451_s0 = inlined_call_operand.hbm [shape: f32[8,64], index: 0, kind: input, shape index: {}]   ;;  %s452_s1 = inlined_call_operand.hbm [shape: f32[64,128], index: 1, kind: input, shape index: {}]   ;;  %s453_s2 = inlined_call_operand.vmem [shape: f32[1,128], index: 2, kind: input, shape index: {}]   ;;  %s454_s3 = inlined_call_operand.hbm [shape: f32[128,128], index: 3, kind: input, shape index: {}]   ;;  %s455_s4 = inlined_call_operand.vmem [shape: f32[1,128], index: 4, kind: input, shape index: {}]   ;;  %s456_s5 = inlined_call_operand.hbm [shape: f32[128,128], index: 5, kind: input, shape index: {}]   ;;  %s457_s6 = inlined_call_operand.vmem [shape: f32[1,128], index: 6, kind: input, shape index: {}]   ;;  %s458_s7 = inlined_call_operand.hbm [shape: f32[8,128], index: 7, kind: output, shape index: {}]  }
   0x1   :  { %13 = vsyncpa [#allocation6], 0 }
   0x2   :  { %14 = vsyncpa [#allocation9], 0  ;;  %s31_s26 = sshll.u32 %s452_s1, 4  ;;  %s32_s26 = int_to_ptr.hbm [resolvable:$true] %s31_s26 }
   0x3   :  { %15 = vsyncpa [#allocation4], 0  ;;  %s380_s27 = smov [#allocation5]   ;;  %s21_s8 = sshll.u32 %s451_s0, 4  ;;  %s22_s8 = int_to_ptr.hbm [resolvable:$true] %s21_s8 }
   0x4   :  { %s33_s28 = sshll.u32 %s380_s27, 4  ;;  %s381_s9 = smov 128   ;;  %s34_s28 = int_to_ptr.vmem [resolvable:$true] %s33_s28 }
   0x5   :  { %s382_s10 = smov 8   ;;  %s383_s11 = smov [#allocation2]  }
   0x6   :  { %39 = dma.hbm_to_vmem [thread:$0]  %s32_s26, 1024, %s34_s28, [#allocation6], %s381_s9, %s381_s9, %s382_s10  }
   0x7   :  { %s23_s12 = sshll.u32 %s383_s11, 4  ;;  %s46_s15 = sshll.u32 %s454_s3, 4  ;;  %s24_s12 = int_to_ptr.vmem [resolvable:$true] %s23_s12  ;;  %s47_s15 = int_to_ptr.hbm [resolvable:$true] %s46_s15 }
   0x8   :  { %26 = dma.hbm_to_vmem [thread:$0]  %s22_s8, 128, %s24_s12, [#allocation3]  }
   0x9   :  { %s61_s17 = sshll.u32 %s456_s5, 4  ;;  %s384_s18 = smov [#allocation7]   ;;  %s62_s17 = int_to_ptr.hbm [resolvable:$true] %s61_s17 }
   0xa   :  { %s48_s19 = sshll.u32 %s384_s18, 4  ;;  %s385_s0 = smov [#allocation8]   ;;  %s49_s19 = int_to_ptr.vmem [resolvable:$true] %s48_s19 }
   0xb   :  { %54 = dma.hbm_to_vmem [thread:$0]  %s47_s15, 2048, %s49_s19, [#allocation6], %s381_s9, %s381_s9, %s382_s10  }
   0xc   :  { %s63_s20 = sshll.u32 %s385_s0, 4  ;;  %s64_s20 = int_to_ptr.vmem [resolvable:$true] %s63_s20 }
   0xd   :  { %69 = dma.hbm_to_vmem [thread:$0]  %s62_s17, 2048, %s64_s20, [#allocation9], %s381_s9, %s381_s9, %s382_s10  }
   0xe   :  { %372 = dma.done.wait [#allocation3], 128  }
   0xf   :  { %373 = vsyncadd [#allocation3], 4294967168 }
  0x10   :  { %374 = dma.done.wait [#allocation6], 3072  }
  0x11   :  { %375 = vsyncadd [#allocation6], 4294964224 }
  0x12   :  { %376 = dma.done.wait [#allocation9], 2048  }
  0x13   :  { %377 = vsyncadd [#allocation9], 4294965248  ;;  %v96_v0 = vld [vmem:[#allocation5 + $0x38] sm:$0xff]  ;;  %v95_v1 = vld [vmem:[#allocation5 + $0x30] sm:$0xff]  ;;  %vm101_vm0 = vcmask 523264   ;;  %s225_s27 = sshll.u32 %s458_s7, 4  ;;  %s226_s27 = int_to_ptr.hbm [resolvable:$true] %s225_s27 }
  0x14   :  { %113 = vmatpush.msra.mxu0 %v96_v0  ;;  %v94_v2 = vld [vmem:[#allocation5 + $0x28] sm:$0xff]  ;;  %v141_v3 = vld [vmem:[#allocation7 + $0x78] sm:$0xff]  ;;  %v140_v4 = vld [vmem:[#allocation7 + $0x70] sm:$0xff] }
  0x15   :  { %v93_v5 = vld [vmem:[#allocation5 + $0x20] sm:$0xff]  ;;  %146 = vmatpush.msra.mxu1 %v141_v3  ;;  %v139_v6 = vld [vmem:[#allocation7 + $0x68] sm:$0xff]  ;;  %v92_v7 = vld [vmem:[#allocation5 + $0x18] sm:$0xff] }
  0x16   :  { %114 = vmatpush.msra.mxu0 %v95_v1  ;;  %v138_v8 = vld [vmem:[#allocation7 + $0x60] sm:$0xff]  ;;  %v91_v9 = vld [vmem:[#allocation5 + $0x10] sm:$0xff]  ;;  %v137_v10 = vld [vmem:[#allocation7 + $0x58] sm:$0xff] }
  0x17   :  { %147 = vmatpush.msra.mxu1 %v140_v4  ;;  %v90_v11 = vld [vmem:[#allocation5 + $0x8] sm:$0xff]  ;;  %v136_v12 = vld [vmem:[#allocation7 + $0x50] sm:$0xff]  ;;  %v89_v13 = vld [vmem:[#allocation5] sm:$0xff] }
  0x18   :  { %115 = vmatpush.msra.mxu0 %v94_v2  ;;  %v88_v14 = vld [vmem:[#allocation2] sm:$0xff]  ;;  %v135_v15 = vld [vmem:[#allocation7 + $0x48] sm:$0xff]  ;;  %v134_v16 = vld [vmem:[#allocation7 + $0x40] sm:$0xff] }
  0x19   :  { %148 = vmatpush.msra.mxu1 %v139_v6  ;;  %v133_v17 = vld [vmem:[#allocation7 + $0x38] sm:$0xff]  ;;  %v132_v18 = vld [vmem:[#allocation7 + $0x30] sm:$0xff]  ;;  %v131_v19 = vld [vmem:[#allocation7 + $0x28] sm:$0xff] }
  0x1a   :  { %116 = vmatpush.msra.mxu0 %v93_v5  ;;  %v130_v20 = vld [vmem:[#allocation7 + $0x20] sm:$0xff]  ;;  %v129_v21 = vld [vmem:[#allocation7 + $0x18] sm:$0xff]  ;;  %v128_v22 = vld [vmem:[#allocation7 + $0x10] sm:$0xff] }
  0x1b   :  { %149 = vmatpush.msra.mxu1 %v138_v8  ;;  %v127_v23 = vld [vmem:[#allocation7 + $0x8] sm:$0xff]  ;;  %v126_v24 = vld [vmem:[#allocation7] sm:$0xff]  ;;  %v182_v25 = vld [vmem:[#allocation8 + $0x78] sm:$0xff] }
  0x1c   :  { %117 = vmatpush.msra.mxu0 %v92_v7  ;;  %v181_v26 = vld [vmem:[#allocation8 + $0x70] sm:$0xff]  ;;  %187 = vmatpush.msra.mxu2 %v182_v25  ;;  %v180_v27 = vld [vmem:[#allocation8 + $0x68] sm:$0xff]  ;;  %v179_v28 = vld [vmem:[#allocation8 + $0x60] sm:$0xff] }
  0x1d   :  { %150 = vmatpush.msra.mxu1 %v137_v10  ;;  %v178_v29 = vld [vmem:[#allocation8 + $0x58] sm:$0xff]  ;;  %v177_v30 = vld [vmem:[#allocation8 + $0x50] sm:$0xff]  ;;  %v176_v31 = vld [vmem:[#allocation8 + $0x48] sm:$0xff] }
  0x1e   :  { %118 = vmatpush.msra.mxu0 %v91_v9  ;;  %188 = vmatpush.msra.mxu2 %v181_v26  ;;  %v175_v32 = vld [vmem:[#allocation8 + $0x40] sm:$0xff]  ;;  %v174_v33 = vld [vmem:[#allocation8 + $0x38] sm:$0xff]  ;;  %v173_v34 = vld [vmem:[#allocation8 + $0x30] sm:$0xff] }
  0x1f   :  { %151 = vmatpush.msra.mxu1 %v136_v12  ;;  %v172_v35 = vld [vmem:[#allocation8 + $0x28] sm:$0xff]  ;;  %v171_v36 = vld [vmem:[#allocation8 + $0x20] sm:$0xff]  ;;  %v170_v37 = vld [vmem:[#allocation8 + $0x18] sm:$0xff] }
  0x20   :  { %119 = vmatpush.msra.mxu0 %v90_v11  ;;  %189 = vmatpush.msra.mxu2 %v180_v27  ;;  %v245_v38 = vld [vmem:[%s453_s2] ss:$0 sm:$0xff]  ;;  %v169_v42 = vld [vmem:[#allocation8 + $0x10] sm:$0xff]  ;;  %v168_v43 = vld [vmem:[#allocation8 + $0x8] sm:$0xff] }
  0x21   :  { %152 = vmatpush.msra.mxu1 %v135_v15  ;;  %v167_v44 = vld [vmem:[#allocation8] sm:$0xff]  ;;  %v246_v45 = vld [vmem:[%s455_s4] ss:$0 sm:$0xff]  ;;  %s386_s4 = smov [#allocation10]  }
  0x22   :  { %120 = vmatpush.msra.mxu0 %v89_v13  ;;  %190 = vmatpush.msra.mxu2 %v179_v28  ;;  %v247_v49 = vld [vmem:[%s457_s6] ss:$0 sm:$0xff]  ;;  %s223_s24 = sshll.u32 %s386_s4, 4  ;;  %s224_s24 = int_to_ptr.vmem [resolvable:$true] %s223_s24 }
  0x23   :  { %237 = vmatmul.msk.f32.vlgmr.msra.gmra.mxu0 %vm101_vm0, %v88_v14  ;;  %153 = vmatpush.msra.mxu1 %v134_v16 }
  0x24   :  { %191 = vmatpush.msra.mxu2 %v178_v29 }
  0x25   :  { %154 = vmatpush.msra.mxu1 %v133_v17 }
  0x26   :  { %192 = vmatpush.msra.mxu2 %v177_v30 }
  0x27   :  { %155 = vmatpush.msra.mxu1 %v132_v18 }
  0x28   :  { %193 = vmatpush.msra.mxu2 %v176_v31 }
  0x29   :  { %156 = vmatpush.msra.mxu1 %v131_v19 }
  0x2a   :  { %194 = vmatpush.msra.mxu2 %v175_v32 }
  0x2b   :  { %157 = vmatpush.msra.mxu1 %v130_v20 }
  0x2c   :  { %195 = vmatpush.msra.mxu2 %v174_v33 }
  0x2d   :  { %158 = vmatpush.msra.mxu1 %v129_v21 }
  0x2e   :  { %196 = vmatpush.msra.mxu2 %v173_v34 }
  0x2f   :  { %159 = vmatpush.msra.mxu1 %v128_v22 }
  0x30   :  { %197 = vmatpush.msra.mxu2 %v172_v35 }
  0x31   :  { %160 = vmatpush.msra.mxu1 %v127_v23 }
  0x32   :  { %198 = vmatpush.msra.mxu2 %v171_v36 }
  0x33   :  { %161 = vmatpush.msra.mxu1 %v126_v24 }
  0x34   :  { %199 = vmatpush.msra.mxu2 %v170_v37 }
  0x36   :  { %200 = vmatpush.msra.mxu2 %v169_v42 }
  0x38   :  { %201 = vmatpush.msra.mxu2 %v168_v43 }
  0x3a   :  { %202 = vmatpush.msra.mxu2 %v167_v44 }
  0xa0   :  { %v122_v39 = vpop.f32.mrf.mxu0 }
  0xa1   :  { %v123_v40 = vadd.f32 %v245_v38, %v122_v39 }
  0xa3   :  { %v125_v41 = vmax.f32 %v123_v40, 0.0 }
  0xa5   :  { %162 = vmatmul.f32.vlgmr.msra.gmra.mxu1 %v125_v41 }
 0x122   :  { %v163_v46 = vpop.f32.mrf.mxu1 }
 0x123   :  { %v164_v47 = vadd.f32 %v246_v45, %v163_v46 }
 0x125   :  { %v166_v48 = vmax.f32 %v164_v47, 0.0 }
 0x127   :  { %203 = vmatmul.f32.vlgmr.msra.gmra.mxu2 %v166_v48 }
 0x1aa   :  { %v204_v50 = vpop.f32.mrf.mxu2 }
 0x1ab   :  { %v205_v51 = vadd.f32 %v247_v49, %v204_v50 }
 0x1ad   :  { %207 = vmax.xlane.f32.xlu0 %v205_v51 }
 0x220   :  { %v208_v52 = vpop.xlane.xlu0 %207 }
 0x221   :  { %v209_v53 = vsub.f32 %v205_v51, %v208_v52 }
 0x223   :  { %v210_v54 = vmul.f32 1.442695, %v209_v53 }
 0x225   :  { %248 = vpow2.f32 %v210_v54 }
 0x22b   :  { %v249_v55 = vpop.eup %248 }
 0x22c   :  { %212 = vadd.xlane.f32.xlu0 %v249_v55 }
 0x29f   :  { %v213_v56 = vpop.xlane.xlu0 %212 }
 0x2a0   :  { %250 = vlog2.f32 %v213_v56 }
 0x2a6   :  { %v251_v57 = vpop.eup %250 }
 0x2a7   :  { %v215_v58 = vmul.f32 0.6931472, %v251_v57 }
 0x2a9   :  { %v216_v59 = vsub.f32 %v209_v53, %v215_v58 }
 0x2ab   :  { %217 = vst [vmem:[#allocation10] sm:$0xff] %v216_v59 }
 0x2ac   :  { %228 = dma.vmem_to_hbm [thread:$0]  %s224_s24, 128, %s226_s27, [#allocation4]  }
 0x2ad   :  { %378 = dma.done.wait [#allocation4], 128  }
 0x2ae   :  { %379 = vsyncadd [#allocation4], 4294967168 }
 0x2af   :  { %233 = vsyncpa [#allocation3], 1 }
 0x2b0   :  { %234 = vsyncpa [#allocation6], 1 }
 0x2b1   :  { %235 = vsyncpa [#allocation9], 1 }
 0x2b2   :  { %236 = vsyncpa [#allocation4], 1 }

</bundles_post_ra>
